<compile_context>
chip_gen: v5e
topology: v5e:2x2
jax: 0.10.0
libtpu: 0.0.40
codegen_flags: <defaults>
</compile_context>

<pallas_src>
import functools

import jax
import jax.numpy as jnp
from jax import lax
from jax.experimental import pallas as pl
from jax.experimental.pallas import tpu as pltpu

NUM_CLASSES = 100
NC_PAD = 128          # lane-dense padded output width
MAX_TILE_ROWS = 4096  # b_tile*hw_tile cap -> <=16 MiB of double-buffered bf16 windows


# ----------------------------------------------------------------------------
# Plain-JAX ResNet-18 backbone, NHWC (inference-mode BN, deterministic init)
# ----------------------------------------------------------------------------
def conv2d(x, w, stride=1, padding=0):
    return lax.conv_general_dilated(
        x, w,
        window_strides=(stride, stride),
        padding=[(padding, padding), (padding, padding)],
        dimension_numbers=("NHWC", "HWIO", "NHWC"))


def batchnorm(x, p, eps=1e-5):
    gamma, beta, mean, var = p
    inv = gamma / jnp.sqrt(var + eps)
    return x * inv + (beta - mean * inv)          # broadcast over channel (last)


def maxpool3x3s2(x):
    return lax.reduce_window(
        x, -jnp.inf, lax.max,
        window_dimensions=(1, 3, 3, 1),
        window_strides=(1, 2, 2, 1),
        padding=[(0, 0), (1, 1), (1, 1), (0, 0)])


def init_bn(c):
    return (jnp.ones((c,), jnp.float32), jnp.zeros((c,), jnp.float32),
            jnp.zeros((c,), jnp.float32), jnp.ones((c,), jnp.float32))


def init_conv(key, out_c, in_c, k):
    # HWIO layout for NHWC convs
    return 0.05 * jax.random.normal(key, (k, k, in_c, out_c), jnp.float32)


def init_basic_block(key, in_c, out_c, stride):
    k1, k2, k3 = jax.random.split(key, 3)
    p = {
        "conv1": init_conv(k1, out_c, in_c, 3),
        "bn1": init_bn(out_c),
        "conv2": init_conv(k2, out_c, out_c, 3),
        "bn2": init_bn(out_c),
        "stride": stride,
    }
    if stride != 1 or in_c != out_c:
        p["down_conv"] = init_conv(k3, out_c, in_c, 1)
        p["down_bn"] = init_bn(out_c)
    return p


def basic_block(x, p):
    identity = x
    out = conv2d(x, p["conv1"], stride=p["stride"], padding=1)
    out = jax.nn.relu(batchnorm(out, p["bn1"]))
    out = conv2d(out, p["conv2"], stride=1, padding=1)
    out = batchnorm(out, p["bn2"])
    if "down_conv" in p:
        identity = batchnorm(
            conv2d(x, p["down_conv"], stride=p["stride"], padding=0),
            p["down_bn"])
    return jax.nn.relu(out + identity)


def init_resnet18(key, input_channels=2):
    keys = jax.random.split(key, 10)
    params = {"conv1": init_conv(keys[0], 64, input_channels, 7),
              "bn1": init_bn(64)}
    chans = [64, 64, 128, 256, 512]
    ki = 1
    for li in range(1, 5):
        in_c, out_c = chans[li - 1], chans[li]
        stride = 1 if li == 1 else 2
        params[f"layer{li}"] = [
            init_basic_block(keys[ki], in_c, out_c, stride),
            init_basic_block(keys[ki + 1], out_c, out_c, 1),
        ]
        ki += 2
    return params


def resnet18_features(x, params):
    # x: (B, H, W, 2) NHWC -> (B, H/32, W/32, 512), emitted in bf16 so the
    # convert fuses into the last block instead of a standalone HBM pass.
    x = conv2d(x, params["conv1"], stride=2, padding=3)
    x = jax.nn.relu(batchnorm(x, params["bn1"]))
    x = maxpool3x3s2(x)
    for li in range(1, 5):
        for blk in params[f"layer{li}"]:
            x = basic_block(x, blk)
    return x.astype(jnp.bfloat16)


# ----------------------------------------------------------------------------
# Pallas head kernel: global avg pool + fused (1x1 conv @ fc) matmul + bias
# ----------------------------------------------------------------------------
def head_kernel(fm1_ref, fm2_ref, w_ref, b_ref, out_ref, acc_ref,
                *, inv_hw, use_mxu_pool):
    # fm1_ref/fm2_ref : (b_tile, hw_tile, 512) bf16 feature-map tiles (lane=C)
    # w_ref           : (1024, 128) bf16 fused weight W_comb
    # b_ref           : (1, 128) f32 padded fc bias
    # out_ref         : (1, b_tile, 128) f32 padded logits for this batch block
    # acc_ref         : (b_tile, 1024) f32 pooled-sum accumulator (VMEM scratch)
    bt, hw, c = fm1_ref.shape
    t = pl.program_id(1)

    @pl.when(t == 0)
    def _():
        acc_ref[...] = jnp.zeros_like(acc_ref)

    if use_mxu_pool:
        # Spatial reduction on the MXU (f32 accumulation): ones(bt,1,hw) @ fm.
        ones = jnp.ones((bt, 1, hw), jnp.bfloat16)
        dn = (((2,), (1,)), ((0,), (0,)))
        p1 = lax.dot_general(ones, fm1_ref[...], dn,
                             preferred_element_type=jnp.float32)[:, 0, :]
        p2 = lax.dot_general(ones, fm2_ref[...], dn,
                             preferred_element_type=jnp.float32)[:, 0, :]
        acc_ref[:, 0:c] += p1
        acc_ref[:, c:2 * c] += p2
    else:
        # Tiny tiles (bt <= 8, hw < 256): cheap 2-D sublane sums per batch row.
        for bi in range(bt):
            acc_ref[bi:bi + 1, 0:c] += jnp.sum(
                fm1_ref[bi].astype(jnp.float32), axis=0, keepdims=True)
            acc_ref[bi:bi + 1, c:2 * c] += jnp.sum(
                fm2_ref[bi].astype(jnp.float32), axis=0, keepdims=True)

    @pl.when(t == pl.num_programs(1) - 1)
    def _():
        # Single scale at finalize, then ONE fused MXU matmul
        # (equivalent to conv1x1 -> avgpool -> fc, all linear).
        pooled = (acc_ref[...] * inv_hw).astype(jnp.bfloat16)
        out = jnp.dot(pooled, w_ref[...], preferred_element_type=jnp.float32)
        out_ref[0] = out + b_ref[...]


def head_pallas(fm1, fm2, w_comb, b_pad):
    # fm1/fm2: (B, h, w, 512) NHWC bf16 feature maps (one per backbone)
    B, h, w, C = fm1.shape
    HW = h * w
    inv_hw = 1.0 / float(HW)

    # Channels already last: reshape is free (metadata only).
    fm1 = fm1.reshape(B, HW, C)
    fm2 = fm2.reshape(B, HW, C)
    if fm1.dtype != jnp.bfloat16:
        fm1 = fm1.astype(jnp.bfloat16)
    if fm2.dtype != jnp.bfloat16:
        fm2 = fm2.astype(jnp.bfloat16)

    # Tile selection. Real feature maps are tiny (HW=4 for 64x64 inputs), so
    # the common case collapses to a single kernel invocation. The cap keeps
    # 2 inputs x 2 buffers x tile under ~16 MiB (fits v7x 64 MiB / v5e scoped).
    if B * HW <= MAX_TILE_ROWS:
        b_tile, hw_tile = B, HW            # single invocation: grid = (1, 1)
    elif HW <= 1024:
        hw_tile = HW                       # full spatial extent, block batch
        b_tile = max(1, min(B, MAX_TILE_ROWS // max(HW, 1)))
    else:
        hw_tile = 1024                     # 1 MiB/input/step DMA windows
        b_tile = max(1, min(B, MAX_TILE_ROWS // hw_tile))

    # Zero-padding: zero rows don't change sums; inv_hw uses the true HW.
    hw_rem = (-HW) % hw_tile
    if hw_rem:
        fm1 = jnp.pad(fm1, ((0, 0), (0, hw_rem), (0, 0)))
        fm2 = jnp.pad(fm2, ((0, 0), (0, hw_rem), (0, 0)))
    b_rem = (-B) % b_tile
    if b_rem:
        fm1 = jnp.pad(fm1, ((0, b_rem), (0, 0), (0, 0)))
        fm2 = jnp.pad(fm2, ((0, b_rem), (0, 0), (0, 0)))
    B_p, HW_p = fm1.shape[0], fm1.shape[1]
    nb, nt = B_p // b_tile, HW_p // hw_tile

    use_mxu_pool = (hw_tile >= 256) or (b_tile > 8)

    # Advisory cost hint: head is a tiny mem-bound op between big XLA convs.
    cost = pl.CostEstimate(
        flops=int(2 * B_p * HW_p * 2 * C + 2 * B_p * 2 * C * NC_PAD),
        transcendentals=0,
        bytes_accessed=int(2 * B_p * HW_p * C * 2 + 2 * C * NC_PAD * 2
                           + B_p * NC_PAD * 4 + NC_PAD * 4))

    out = pl.pallas_call(
        functools.partial(head_kernel, inv_hw=inv_hw,
                          use_mxu_pool=use_mxu_pool),
        out_shape=jax.ShapeDtypeStruct((nb, b_tile, NC_PAD), jnp.float32),
        grid_spec=pltpu.PrefetchScalarGridSpec(
            num_scalar_prefetch=0,
            grid=(nb, nt),
            in_specs=[
                pl.BlockSpec((b_tile, hw_tile, C), lambda b, t: (b, t, 0)),
                pl.BlockSpec((b_tile, hw_tile, C), lambda b, t: (b, t, 0)),
                pl.BlockSpec((2 * C, NC_PAD), lambda b, t: (0, 0)),
                pl.BlockSpec((1, NC_PAD), lambda b, t: (0, 0)),
            ],
            out_specs=pl.BlockSpec((1, b_tile, NC_PAD),
                                   lambda b, t: (b, 0, 0)),
            scratch_shapes=[pltpu.VMEM((b_tile, 2 * C), jnp.float32)],
        ),
        compiler_params=pltpu.CompilerParams(
            dimension_semantics=("parallel", "arbitrary"),
            vmem_limit_bytes=32 * 1024 * 1024),
        cost_estimate=cost,
    )(fm1, fm2, w_comb, b_pad)

    return out.reshape(nb * b_tile, NC_PAD)[:B, :NUM_CLASSES]
    # TODO(synk): on v7x with B==1 the single-invocation path uses one of the
    # two TensorCores; split the HW axis across cores if that ever matters.


# ----------------------------------------------------------------------------
# Full model
# ----------------------------------------------------------------------------
def init_model(key):
    k1, k2, k3, k4, k5 = jax.random.split(key, 5)
    conv1_w = 0.02 * jax.random.normal(k3, (512, 1024), jnp.float32)  # (C2, C1)
    fc_w = 0.02 * jax.random.normal(k4, (NUM_CLASSES, 512), jnp.float32)
    fc_b = 0.01 * jax.random.normal(k5, (NUM_CLASSES,), jnp.float32)

    # Fuse conv1 (bias-free 1x1) and fc once at init: since avgpool is linear
    # and there is no nonlinearity between them in the reference forward,
    #   fc(avgpool(conv1(fm))) == mean_hw(fm) @ conv1_w.T @ fc_w.T + fc_b.
    w_comb = conv1_w.T @ fc_w.T                                # (1024, 100)
    w_comb = jnp.pad(w_comb, ((0, 0), (0, NC_PAD - NUM_CLASSES)))
    b_pad = jnp.pad(fc_b, (0, NC_PAD - NUM_CLASSES)).reshape(1, NC_PAD)

    return {
        "resnet1": init_resnet18(k1, input_channels=2),
        "resnet2": init_resnet18(k2, input_channels=2),
        "w_comb": w_comb.astype(jnp.bfloat16),     # single fused (1024, 128)
        "b_pad": b_pad,
    }


def model_forward(x, params):
    # x: (B, 4, H, W) NCHW (PyTorch layout) -> NHWC once for the TPU convs.
    x = jnp.transpose(x, (0, 2, 3, 1))                         # (B, H, W, 4)
    x1 = jnp.concatenate([x[..., 0:1], x[..., 2:3]], axis=-1)  # channels (0, 2)
    x2 = jnp.concatenate([x[..., 1:2], x[..., 3:4]], axis=-1)  # channels (1, 3)
    fm1 = resnet18_features(x1, params["resnet1"])             # (B, h, w, 512) bf16
    fm2 = resnet18_features(x2, params["resnet2"])             # (B, h, w, 512) bf16
    return head_pallas(fm1, fm2, params["w_comb"], params["b_pad"])


if __name__ == "__main__":
    key = jax.random.PRNGKey(0)
    kp, kx = jax.random.split(key)
    params = init_model(kp)

    x = jax.random.normal(kx, (2, 4, 64, 64), dtype=jnp.float32)

    fwd = jax.jit(functools.partial(model_forward, params=params))
    out = jax.block_until_ready(fwd(x))

    assert out.shape == (2, NUM_CLASSES), out.shape
    assert bool(jnp.all(jnp.isfinite(out)))
    print("KERNEL_OK")
</pallas_src>

<mosaic_0001>
module attributes {stable_mosaic.version = 11 : i64} {
  func.func @head_kernel(%arg0: i32, %arg1: i32, %arg2: memref<2x4x512xbf16, #tpu.memory_space<vmem>>, %arg3: memref<2x4x512xbf16, #tpu.memory_space<vmem>>, %arg4: memref<1024x128xbf16, #tpu.memory_space<vmem>>, %arg5: memref<1x128xf32, #tpu.memory_space<vmem>>, %arg6: memref<1x2x128xf32, #tpu.memory_space<vmem>>, %arg7: memref<2x1024xf32, #tpu.memory_space<vmem>>) attributes {dimension_semantics = [#tpu.dimension_semantics<parallel>, #tpu.dimension_semantics<arbitrary>], iteration_bounds = array<i64: 1, 1>, scalar_prefetch = 0 : i64, scratch_operands = 1 : i64, tpu.core_type = #tpu.core_type<tc>, window_params = [{transform_indices = @transform_0, window_bounds = array<i64: 2, 4, 512>}, {transform_indices = @transform_1, window_bounds = array<i64: 2, 4, 512>}, {pipeline_mode = #tpu.pipeline_mode<synchronous>, transform_indices = @transform_2, window_bounds = array<i64: 1024, 128>}, {pipeline_mode = #tpu.pipeline_mode<synchronous>, transform_indices = @transform_3, window_bounds = array<i64: 1, 128>}, {transform_indices = @transform_4, window_bounds = array<i64: 1, 2, 128>}]} {
    %c0_i32 = arith.constant 0 : i32
    %0 = arith.cmpi eq, %arg1, %c0_i32 : i32
    %1 = arith.extui %0 : i1 to i32
    %c0_i32_0 = arith.constant 0 : i32
    %2 = arith.cmpi ne, %1, %c0_i32_0 : i32
    scf.if %2 {
      %cst_31 = arith.constant 0.000000e+00 : f32
      %38 = vector.broadcast %cst_31 : f32 to vector<2x1024xf32>
      %c0_32 = arith.constant 0 : index
      %c0_33 = arith.constant 0 : index
      %39 = vector.load %arg7[%c0_32, %c0_33] : memref<2x1024xf32, #tpu.memory_space<vmem>>, vector<2x1024xf32>
      tpu.vector_store %arg7[%c0_32, %c0_33], %38 {strides = array<i32>} : memref<2x1024xf32, #tpu.memory_space<vmem>>, vector<2x1024xf32>,
    } else {
    }
    %c0 = arith.constant 0 : index
    %c0_1 = arith.constant 0 : index
    %3 = vector.load %arg7[%c0, %c0_1] : memref<2x1024xf32, #tpu.memory_space<vmem>>, vector<1x512xf32>
    %c0_2 = arith.constant 0 : index
    %c0_3 = arith.constant 0 : index
    %c0_4 = arith.constant 0 : index
    %4 = vector.load %arg2[%c0_2, %c0_3, %c0_4] : memref<2x4x512xbf16, #tpu.memory_space<vmem>>, vector<1x4x512xbf16>
    %5 = vector.shape_cast %4 : vector<1x4x512xbf16> to vector<4x512xbf16>
    %6 = arith.extf %5 : vector<4x512xbf16> to vector<4x512xf32>
    %cst = arith.constant dense<0.000000e+00> : vector<512xf32>
    %7 = vector.multi_reduction <add>, %6, %cst [0] : vector<4x512xf32> to vector<512xf32>
    %8 = vector.shape_cast %7 : vector<512xf32> to vector<1x512xf32>
    %9 = arith.addf %3, %8 : vector<1x512xf32>
    %c0_5 = arith.constant 0 : index
    %c0_6 = arith.constant 0 : index
    %10 = vector.load %arg7[%c0_5, %c0_6] : memref<2x1024xf32, #tpu.memory_space<vmem>>, vector<1x512xf32>
    tpu.vector_store %arg7[%c0_5, %c0_6], %9 {strides = array<i32>} : memref<2x1024xf32, #tpu.memory_space<vmem>>, vector<1x512xf32>,
    %c0_7 = arith.constant 0 : index
    %c512 = arith.constant 512 : index
    %11 = vector.load %arg7[%c0_7, %c512] : memref<2x1024xf32, #tpu.memory_space<vmem>>, vector<1x512xf32>
    %c0_8 = arith.constant 0 : index
    %c0_9 = arith.constant 0 : index
    %c0_10 = arith.constant 0 : index
    %12 = vector.load %arg3[%c0_8, %c0_9, %c0_10] : memref<2x4x512xbf16, #tpu.memory_space<vmem>>, vector<1x4x512xbf16>
    %13 = vector.shape_cast %12 : vector<1x4x512xbf16> to vector<4x512xbf16>
    %14 = arith.extf %13 : vector<4x512xbf16> to vector<4x512xf32>
    %cst_11 = arith.constant dense<0.000000e+00> : vector<512xf32>
    %15 = vector.multi_reduction <add>, %14, %cst_11 [0] : vector<4x512xf32> to vector<512xf32>
    %16 = vector.shape_cast %15 : vector<512xf32> to vector<1x512xf32>
    %17 = arith.addf %11, %16 : vector<1x512xf32>
    %c0_12 = arith.constant 0 : index
    %c512_13 = arith.constant 512 : index
    %18 = vector.load %arg7[%c0_12, %c512_13] : memref<2x1024xf32, #tpu.memory_space<vmem>>, vector<1x512xf32>
    tpu.vector_store %arg7[%c0_12, %c512_13], %17 {strides = array<i32>} : memref<2x1024xf32, #tpu.memory_space<vmem>>, vector<1x512xf32>,
    %c1 = arith.constant 1 : index
    %c0_14 = arith.constant 0 : index
    %19 = vector.load %arg7[%c1, %c0_14] : memref<2x1024xf32, #tpu.memory_space<vmem>>, vector<1x512xf32>
    %c1_15 = arith.constant 1 : index
    %c0_16 = arith.constant 0 : index
    %c0_17 = arith.constant 0 : index
    %20 = vector.load %arg2[%c1_15, %c0_16, %c0_17] : memref<2x4x512xbf16, #tpu.memory_space<vmem>>, vector<1x4x512xbf16>
    %21 = vector.shape_cast %20 : vector<1x4x512xbf16> to vector<4x512xbf16>
    %22 = arith.extf %21 : vector<4x512xbf16> to vector<4x512xf32>
    %cst_18 = arith.constant dense<0.000000e+00> : vector<512xf32>
    %23 = vector.multi_reduction <add>, %22, %cst_18 [0] : vector<4x512xf32> to vector<512xf32>
    %24 = vector.shape_cast %23 : vector<512xf32> to vector<1x512xf32>
    %25 = arith.addf %19, %24 : vector<1x512xf32>
    %c1_19 = arith.constant 1 : index
    %c0_20 = arith.constant 0 : index
    %26 = vector.load %arg7[%c1_19, %c0_20] : memref<2x1024xf32, #tpu.memory_space<vmem>>, vector<1x512xf32>
    tpu.vector_store %arg7[%c1_19, %c0_20], %25 {strides = array<i32>} : memref<2x1024xf32, #tpu.memory_space<vmem>>, vector<1x512xf32>,
    %c1_21 = arith.constant 1 : index
    %c512_22 = arith.constant 512 : index
    %27 = vector.load %arg7[%c1_21, %c512_22] : memref<2x1024xf32, #tpu.memory_space<vmem>>, vector<1x512xf32>
    %c1_23 = arith.constant 1 : index
    %c0_24 = arith.constant 0 : index
    %c0_25 = arith.constant 0 : index
    %28 = vector.load %arg3[%c1_23, %c0_24, %c0_25] : memref<2x4x512xbf16, #tpu.memory_space<vmem>>, vector<1x4x512xbf16>
    %29 = vector.shape_cast %28 : vector<1x4x512xbf16> to vector<4x512xbf16>
    %30 = arith.extf %29 : vector<4x512xbf16> to vector<4x512xf32>
    %cst_26 = arith.constant dense<0.000000e+00> : vector<512xf32>
    %31 = vector.multi_reduction <add>, %30, %cst_26 [0] : vector<4x512xf32> to vector<512xf32>
    %32 = vector.shape_cast %31 : vector<512xf32> to vector<1x512xf32>
    %33 = arith.addf %27, %32 : vector<1x512xf32>
    %c1_27 = arith.constant 1 : index
    %c512_28 = arith.constant 512 : index
    %34 = vector.load %arg7[%c1_27, %c512_28] : memref<2x1024xf32, #tpu.memory_space<vmem>>, vector<1x512xf32>
    tpu.vector_store %arg7[%c1_27, %c512_28], %33 {strides = array<i32>} : memref<2x1024xf32, #tpu.memory_space<vmem>>, vector<1x512xf32>,
    %c0_i32_29 = arith.constant 0 : i32
    %35 = arith.cmpi eq, %arg1, %c0_i32_29 : i32
    %36 = arith.extui %35 : i1 to i32
    %c0_i32_30 = arith.constant 0 : i32
    %37 = arith.cmpi ne, %36, %c0_i32_30 : i32
    scf.if %37 {
      %c0_31 = arith.constant 0 : index
      %c0_32 = arith.constant 0 : index
      %38 = vector.load %arg7[%c0_31, %c0_32] : memref<2x1024xf32, #tpu.memory_space<vmem>>, vector<2x1024xf32>
      %cst_33 = arith.constant 2.500000e-01 : f32
      %39 = vector.broadcast %cst_33 : f32 to vector<2x1024xf32>
      %40 = arith.mulf %38, %39 : vector<2x1024xf32>
      %41 = arith.truncf %40 : vector<2x1024xf32> to vector<2x1024xbf16>
      %c0_34 = arith.constant 0 : index
      %c0_35 = arith.constant 0 : index
      %42 = vector.load %arg4[%c0_34, %c0_35] : memref<1024x128xbf16, #tpu.memory_space<vmem>>, vector<1024x128xbf16>
      %cst_36 = arith.constant dense<0.000000e+00> : vector<2x128xf32>
      %43 = tpu.matmul %41, %42, %cst_36 {dimension_numbers = #tpu.dot_dimension_numbers<[1], [0], [0], [1], [0, 0, 1, 1], [], []>} : vector<2x1024xbf16>, vector<1024x128xbf16>, vector<2x128xf32> -> vector<2x128xf32>
      %c0_37 = arith.constant 0 : index
      %c0_38 = arith.constant 0 : index
      %44 = vector.load %arg5[%c0_37, %c0_38] : memref<1x128xf32, #tpu.memory_space<vmem>>, vector<1x128xf32>
      %45 = vector.broadcast %44 : vector<1x128xf32> to vector<2x128xf32>
      %46 = arith.addf %43, %45 : vector<2x128xf32>
      %c0_39 = arith.constant 0 : index
      %c0_40 = arith.constant 0 : index
      %c0_41 = arith.constant 0 : index
      %47 = vector.load %arg6[%c0_39, %c0_40, %c0_41] : memref<1x2x128xf32, #tpu.memory_space<vmem>>, vector<1x2x128xf32>
      %48 = vector.shape_cast %47 : vector<1x2x128xf32> to vector<2x128xf32>
      %49 = vector.shape_cast %46 : vector<2x128xf32> to vector<1x2x128xf32>
      tpu.vector_store %arg6[%c0_39, %c0_40, %c0_41], %49 {strides = array<i32>} : memref<1x2x128xf32, #tpu.memory_space<vmem>>, vector<1x2x128xf32>,
    } else {
    }
    return
  }
  func.func @transform_0(%arg0: i32, %arg1: i32) -> (i32, i32, i32) {
    %c0_i32 = arith.constant 0 : i32
    %c0_i32_0 = arith.constant 0 : i32
    return %arg0, %arg1, %c0_i32 : i32, i32, i32
  }
  func.func @transform_1(%arg0: i32, %arg1: i32) -> (i32, i32, i32) {
    %c0_i32 = arith.constant 0 : i32
    %c0_i32_0 = arith.constant 0 : i32
    return %arg0, %arg1, %c0_i32 : i32, i32, i32
  }
  func.func @transform_2(%arg0: i32, %arg1: i32) -> (i32, i32) {
    %c0_i32 = arith.constant 0 : i32
    %c0_i32_0 = arith.constant 0 : i32
    %c0_i32_1 = arith.constant 0 : i32
    return %c0_i32, %c0_i32_0 : i32, i32
  }
  func.func @transform_3(%arg0: i32, %arg1: i32) -> (i32, i32) {
    %c0_i32 = arith.constant 0 : i32
    %c0_i32_0 = arith.constant 0 : i32
    %c0_i32_1 = arith.constant 0 : i32
    return %c0_i32, %c0_i32_0 : i32, i32
  }
  func.func @transform_4(%arg0: i32, %arg1: i32) -> (i32, i32, i32) {
    %c0_i32 = arith.constant 0 : i32
    %c0_i32_0 = arith.constant 0 : i32
    %c0_i32_1 = arith.constant 0 : i32
    return %arg0, %c0_i32, %c0_i32_0 : i32, i32, i32
  }
}

</mosaic_0001>

<bundles_post_ra>
// kernel: model_forward.1
= control target key start
LH: loop header
LB: loop body
LE: loop exit
PB: predicated region body
PF: predicated region fallthrough
CT: control target
= control target key end

     0   :  { %v1293_v4 = vmov 0.0   ;;  %s1570_s0 = inlined_call_operand.vmem [shape: bf16[2,4,512], index: 0, kind: input, shape index: {}]   ;;  %s1571_s1 = inlined_call_operand.vmem [shape: bf16[2,4,512], index: 1, kind: input, shape index: {}]   ;;  %s1572_s2 = inlined_call_operand.vmem [shape: bf16[1024,128], index: 2, kind: input, shape index: {}]   ;;  %s1573_s3 = inlined_call_operand.vmem [shape: f32[1,128], index: 3, kind: input, shape index: {}]   ;;  %s1574_s4 = inlined_call_operand.hbm [shape: f32[1,2,128], index: 4, kind: output, shape index: {}]  }
   0x1   :  { %v1207_v0 = vld [vmem:[%s1572_s2 + $0x38] sm:$0xff]  ;;  %22 = vst [vmem:[#allocation2] sm:$0xff] %v1293_v4  ;;  %v1206_v5 = vld [vmem:[%s1572_s2 + $0x30] sm:$0xff]  ;;  %v1205_v9 = vld [vmem:[%s1572_s2 + $0x28] sm:$0xff] }
   0x2   :  { %v1215_v1 = vld [vmem:[%s1572_s2 + $0x78] sm:$0xff]  ;;  %821 = vmatpush.bf16.msra.mxu0 %v1207_v0  ;;  %v1214_v6 = vld [vmem:[%s1572_s2 + $0x70] sm:$0xff]  ;;  %23 = vst [vmem:[#allocation2 + $0x8] sm:$0xff] %v1293_v4  ;;  %v1213_v10 = vld [vmem:[%s1572_s2 + $0x68] sm:$0xff] }
   0x3   :  { %v1223_v2 = vld [vmem:[%s1572_s2 + $0xb8] sm:$0xff]  ;;  %834 = vmatpush.bf16.msra.mxu1 %v1215_v1  ;;  %v1222_v7 = vld [vmem:[%s1572_s2 + $0xb0] sm:$0xff]  ;;  %v1221_v11 = vld [vmem:[%s1572_s2 + $0xa8] sm:$0xff] }
   0x4   :  { %v1231_v3 = vld [vmem:[%s1572_s2 + $0xf8] sm:$0xff]  ;;  %847 = vmatpush.bf16.msra.mxu2 %v1223_v2  ;;  %v1230_v8 = vld [vmem:[%s1572_s2 + $0xf0] sm:$0xff]  ;;  %v1229_v12 = vld [vmem:[%s1572_s2 + $0xe8] sm:$0xff] }
   0x5   :  { %860 = vmatpush.bf16.msra.mxu3 %v1231_v3  ;;  %v1204_v13 = vld [vmem:[%s1572_s2 + $0x20] sm:$0xff]  ;;  %v1203_v17 = vld [vmem:[%s1572_s2 + $0x18] sm:$0xff]  ;;  %v1202_v24 = vld [vmem:[%s1572_s2 + $0x10] sm:$0xff] }
   0x6   :  { %822 = vmatpush.bf16.msra.mxu0 %v1206_v5  ;;  %v1212_v14 = vld [vmem:[%s1572_s2 + $0x60] sm:$0xff]  ;;  %v1211_v18 = vld [vmem:[%s1572_s2 + $0x58] sm:$0xff]  ;;  %v1210_v25 = vld [vmem:[%s1572_s2 + $0x50] sm:$0xff] }
   0x7   :  { %835 = vmatpush.bf16.msra.mxu1 %v1214_v6  ;;  %v1220_v15 = vld [vmem:[%s1572_s2 + $0xa0] sm:$0xff]  ;;  %v1219_v19 = vld [vmem:[%s1572_s2 + $0x98] sm:$0xff] }
   0x8   :  { %848 = vmatpush.bf16.msra.mxu2 %v1222_v7  ;;  %v1228_v16 = vld [vmem:[%s1572_s2 + $0xe0] sm:$0xff]  ;;  %v1227_v20 = vld [vmem:[%s1572_s2 + $0xd8] sm:$0xff] }
   0x9   :  { %861 = vmatpush.bf16.msra.mxu3 %v1230_v8  ;;  %v25_v21 = vld [vmem:[%s1570_s0] sm:$0xff] }
   0xa   :  { %823 = vmatpush.bf16.msra.mxu0 %v1205_v9  ;;  %v26_v22 = vunpack.c.l.bf16 %v25_v21  ;;  %v27_v23 = vunpack.c.h.bf16 %v25_v21 }
   0xb   :  { %836 = vmatpush.bf16.msra.mxu1 %v1213_v10 }
   0xc   :  { %849 = vmatpush.bf16.msra.mxu2 %v1221_v11 }
   0xd   :  { %862 = vmatpush.bf16.msra.mxu3 %v1229_v12 }
   0xe   :  { %824 = vmatpush.bf16.msra.mxu0 %v1204_v13 }
   0xf   :  { %837 = vmatpush.bf16.msra.mxu1 %v1212_v14 }
  0x10   :  { %850 = vmatpush.bf16.msra.mxu2 %v1220_v15 }
  0x11   :  { %863 = vmatpush.bf16.msra.mxu3 %v1228_v16 }
  0x12   :  { %825 = vmatpush.bf16.msra.mxu0 %v1203_v17 }
  0x13   :  { %838 = vmatpush.bf16.msra.mxu1 %v1211_v18 }
  0x14   :  { %9 = vsyncpa [#allocation4], 0  ;;  %851 = vmatpush.bf16.msra.mxu2 %v1219_v19  ;;  %v1218_v26 = vld [vmem:[%s1572_s2 + $0x90] sm:$0xff]  ;;  %30 = vst [vmem:[#allocation1] ss:$2 sm:$0xff] %v26_v22  ;;  %v92_v28 = vld [vmem:[%s1571_s1] sm:$0xff]  ;;  %v85_v16 = vlaneseq }
  0x15   :  { %864 = vmatpush.bf16.msra.mxu3 %v1227_v20  ;;  %v1226_v27 = vld [vmem:[%s1572_s2 + $0xd0] sm:$0xff]  ;;  %32 = vst [vmem:[#allocation1 + $0x10] ss:$2 sm:$0xff] %v27_v23  ;;  %v1201_v29 = vld [vmem:[%s1572_s2 + $0x8] sm:$0xff]  ;;  %v1200_v33 = vld [vmem:[%s1572_s2] sm:$0xff]  ;;  %v93_v34 = vunpack.c.l.bf16 %v92_v28  ;;  %vm41_vm0 = vcmask 1043456   ;;  %v94_v38 = vunpack.c.h.bf16 %v92_v28 }
  0x16   :  { %826 = vmatpush.bf16.msra.mxu0 %v1202_v24  ;;  %v1209_v30 = vld [vmem:[%s1572_s2 + $0x48] sm:$0xff]  ;;  %v1208_v35 = vld [vmem:[%s1572_s2 + $0x40] sm:$0xff]  ;;  %v1239_v39 = vld [vmem:[%s1572_s2 + $0x138] sm:$0xff]  ;;  %vm77_vm1 = vcmask 1040384   ;;  %vm79_vm2 = vcmask 1042434   ;;  %vm81_vm3 = vcmask 1041408  }
  0x17   :  { %839 = vmatpush.bf16.msra.mxu1 %v1210_v25  ;;  %v1217_v31 = vld [vmem:[%s1572_s2 + $0x88] sm:$0xff]  ;;  %v1216_v36 = vld [vmem:[%s1572_s2 + $0x80] sm:$0xff]  ;;  %v1247_v40 = vld [vmem:[%s1572_s2 + $0x178] sm:$0xff]  ;;  %vm1484_vm4 = vcmp.lt.s32.totalorder %v85_v16, 512  ;;  %s1294_s18 = smov [#allocation3]   ;;  %s933_s20 = sshll.u32 %s1574_s4, 4  ;;  %s934_s20 = int_to_ptr.hbm [resolvable:$true] %s933_s20 }
  0x18   :  { %852 = vmatpush.bf16.msra.mxu2 %v1218_v26  ;;  %v1225_v32 = vld [vmem:[%s1572_s2 + $0xc8] sm:$0xff]  ;;  %v1224_v37 = vld [vmem:[%s1572_s2 + $0xc0] sm:$0xff]  ;;  %v1255_v43 = vld [vmem:[%s1572_s2 + $0x1b8] sm:$0xff] }
  0x19   :  { %865 = vmatpush.bf16.msra.mxu3 %v1226_v27  ;;  %v1263_v44 = vld [vmem:[%s1572_s2 + $0x1f8] sm:$0xff]  ;;  %v942_v55 = vld [vmem:[%s1570_s0 + $0x8] sm:$0xff]  ;;  %v1238_v59 = vld [vmem:[%s1572_s2 + $0x130] sm:$0xff] }
  0x1a   :  { %827 = vmatpush.bf16.msra.mxu0 %v1201_v29  ;;  %v1246_v60 = vld [vmem:[%s1572_s2 + $0x170] sm:$0xff]  ;;  %v153_v3 = vunpack.c.l.bf16 %v942_v55  ;;  %v1237_v4 = vld [vmem:[%s1572_s2 + $0x128] sm:$0xff]  ;;  %v154_v7 = vunpack.c.h.bf16 %v942_v55 }
  0x1b   :  { %840 = vmatpush.bf16.msra.mxu1 %v1209_v30  ;;  %v33_v41 = vld.sshfl [vmem:[#allocation1] sm:$0xff pattern:$0x75316420]  ;;  %v34_v42 = vld.sshfl [vmem:[#allocation1 + $0x8] sm:$0xff pattern:$0x75316420] }
  0x1c   :  { %853 = vmatpush.bf16.msra.mxu2 %v1217_v31  ;;  %v35_v45 = vld.sshfl [vmem:[#allocation1 + $0x10] sm:$0xff pattern:$0x75316420]  ;;  %v36_v46 = vld.sshfl [vmem:[#allocation1 + $0x18] sm:$0xff pattern:$0x75316420] }
  0x1d   :  { %866 = vmatpush.bf16.msra.mxu3 %v1225_v32  ;;  %v42_v47 = vsel %vm41_vm0, %v33_v41, 0.0  ;;  %v49_v48 = vsel %vm41_vm0, %v34_v42, 0.0  ;;  %v56_v49 = vsel %vm41_vm0, %v35_v45, 0.0  ;;  %v63_v50 = vsel %vm41_vm0, %v36_v46, 0.0  ;;  %97 = vst [vmem:[#allocation1] ss:$2 sm:$0xff] %v93_v34 }
  0x1e   :  { %v43_v51 = vrot.slane %v42_v47, 4  ;;  %v50_v52 = vrot.slane %v49_v48, 4  ;;  %v57_v53 = vrot.slane %v56_v49, 4  ;;  %v64_v54 = vrot.slane %v63_v50, 4  ;;  %99 = vst [vmem:[#allocation1 + $0x10] ss:$2 sm:$0xff] %v94_v38  ;;  %828 = vmatpush.bf16.msra.mxu0 %v1200_v33 }
  0x1f   :  { %841 = vmatpush.bf16.msra.mxu1 %v1208_v35  ;;  %v1254_v62 = vld [vmem:[%s1572_s2 + $0x1b0] sm:$0xff]  ;;  %v1245_v5 = vld [vmem:[%s1572_s2 + $0x168] sm:$0xff]  ;;  %v1236_v31 = vld [vmem:[%s1572_s2 + $0x120] sm:$0xff] }
  0x20   :  { %854 = vmatpush.bf16.msra.mxu2 %v1216_v36  ;;  %v44_v56 = vadd.f32 %v43_v51, %v42_v47  ;;  %v51_v57 = vadd.f32 %v50_v52, %v49_v48  ;;  %v58_v58 = vadd.f32 %v57_v53, %v56_v49  ;;  %v65_v61 = vadd.f32 %v64_v54, %v63_v50  ;;  %v1262_v63 = vld [vmem:[%s1572_s2 + $0x1f0] sm:$0xff]  ;;  %v1253_v8 = vld [vmem:[%s1572_s2 + $0x1a8] sm:$0xff]  ;;  %v1244_v32 = vld [vmem:[%s1572_s2 + $0x160] sm:$0xff] }
  0x21   :  { %867 = vmatpush.bf16.msra.mxu3 %v1224_v37  ;;  %v1261_v9 = vld [vmem:[%s1572_s2 + $0x1e8] sm:$0xff]  ;;  %v1252_v38 = vld [vmem:[%s1572_s2 + $0x1a0] sm:$0xff] }
  0x22   :  { %873 = vmatpush.bf16.msrb.mxu0 %v1239_v39  ;;  %v45_v0 = vrot.slane %v44_v56, 2  ;;  %v52_v1 = vrot.slane %v51_v57, 2  ;;  %v59_v2 = vrot.slane %v58_v58, 2  ;;  %v66_v6 = vrot.slane %v65_v61, 2  ;;  %v943_v37 = vld [vmem:[%s1571_s1 + $0x8] sm:$0xff]  ;;  %v1260_v39 = vld [vmem:[%s1572_s2 + $0x1e0] sm:$0xff] }
  0x23   :  { %886 = vmatpush.bf16.msrb.mxu1 %v1247_v40  ;;  %v24_v48 = vld [vmem:[#allocation2] ss:$2 sm:$0xf]  ;;  %v213_v52 = vunpack.c.l.bf16 %v943_v37 }
  0x24   :  { %899 = vmatpush.bf16.msrb.mxu2 %v1255_v43  ;;  %v46_v10 = vadd.f32 %v45_v0, %v44_v56  ;;  %v53_v11 = vadd.f32 %v52_v1, %v51_v57  ;;  %v60_v12 = vadd.f32 %v59_v2, %v58_v58  ;;  %v100_v13 = vld.sshfl [vmem:[#allocation1] sm:$0xff pattern:$0x75316420]  ;;  %v101_v14 = vld.sshfl [vmem:[#allocation1 + $0x8] sm:$0xff pattern:$0x75316420]  ;;  %v67_v15 = vadd.f32 %v66_v6, %v65_v61 }
  0x25   :  { %912 = vmatpush.bf16.msrb.mxu3 %v1263_v44  ;;  %v102_v17 = vld.sshfl [vmem:[#allocation1 + $0x10] sm:$0xff pattern:$0x75316420]  ;;  %v103_v18 = vld.sshfl [vmem:[#allocation1 + $0x18] sm:$0xff pattern:$0x75316420]  ;;  %v214_v57 = vunpack.c.h.bf16 %v943_v37 }
  0x26   :  { %874 = vmatpush.bf16.msrb.mxu0 %v1238_v59  ;;  %v47_v19 = vrot.slane %v46_v10, 1  ;;  %v54_v20 = vrot.slane %v53_v11, 1  ;;  %v61_v21 = vrot.slane %v60_v12, 1  ;;  %v108_v22 = vsel %vm41_vm0, %v100_v13, 0.0  ;;  %157 = vst [vmem:[#allocation1] ss:$2 sm:$0xff] %v153_v3 }
  0x27   :  { %887 = vmatpush.bf16.msrb.mxu1 %v1246_v60  ;;  %v68_v23 = vrot.slane %v67_v15, 1  ;;  %v109_v24 = vrot.slane %v108_v22, 4  ;;  %v115_v25 = vsel %vm41_vm0, %v101_v14, 0.0  ;;  %v122_v26 = vsel %vm41_vm0, %v102_v17, 0.0  ;;  %159 = vst [vmem:[#allocation1 + $0x10] ss:$2 sm:$0xff] %v154_v7 }
  0x28   :  { %900 = vmatpush.bf16.msrb.mxu2 %v1254_v62  ;;  %v48_v27 = vadd.f32 %v47_v19, %v46_v10  ;;  %v55_v28 = vadd.f32 %v54_v20, %v53_v11  ;;  %v62_v29 = vadd.f32 %v61_v21, %v60_v12  ;;  %v116_v30 = vrot.slane %v115_v25, 4 }
  0x29   :  { %913 = vmatpush.bf16.msrb.mxu3 %v1262_v63  ;;  %v69_v33 = vadd.f32 %v68_v23, %v67_v15  ;;  %v110_v34 = vadd.f32 %v109_v24, %v108_v22  ;;  %v123_v35 = vrot.slane %v122_v26, 4  ;;  %v129_v36 = vsel %vm41_vm0, %v103_v18, 0.0 }
  0x2a   :  { %875 = vmatpush.bf16.msrb.mxu0 %v1237_v4  ;;  %v74_v40 = vrot.slane %v55_v28, 7  ;;  %v75_v41 = vrot.slane %v62_v29, 6  ;;  %v117_v42 = vadd.f32 %v116_v30, %v115_v25  ;;  %v130_v43 = vrot.slane %v129_v36, 4 }
  0x2b   :  { %888 = vmatpush.bf16.msrb.mxu1 %v1245_v5  ;;  %v76_v44 = vrot.slane %v69_v33, 5  ;;  %v111_v46 = vrot.slane %v110_v34, 2  ;;  %v124_v47 = vadd.f32 %v123_v35, %v122_v26 }
  0x2c   :  { %901 = vmatpush.bf16.msrb.mxu2 %v1253_v8  ;;  %v78_v49 = vsel %vm77_vm1, %v48_v27, %v74_v40  ;;  %v118_v50 = vrot.slane %v117_v42, 2  ;;  %v131_v51 = vadd.f32 %v130_v43, %v129_v36 }
  0x2d   :  { %914 = vmatpush.bf16.msrb.mxu3 %v1261_v9  ;;  %v80_v53 = vsel %vm79_vm2, %v75_v41, %v76_v44  ;;  %v112_v54 = vadd.f32 %v111_v46, %v110_v34  ;;  %v125_v55 = vrot.slane %v124_v47, 2  ;;  %v160_v56 = vld.sshfl [vmem:[#allocation1] sm:$0xff pattern:$0x75316420]  ;;  %v1235_v41 = vld [vmem:[%s1572_s2 + $0x118] sm:$0xff] }
  0x2e   :  { %876 = vmatpush.bf16.msrb.mxu0 %v1236_v31  ;;  %v82_v58 = vsel %vm81_vm3, %v78_v49, %v80_v53  ;;  %v119_v59 = vadd.f32 %v118_v50, %v117_v42  ;;  %v132_v60 = vrot.slane %v131_v51, 2  ;;  %v161_v61 = vld.sshfl [vmem:[#allocation1 + $0x8] sm:$0xff pattern:$0x75316420]  ;;  %v168_v62 = vsel %vm41_vm0, %v160_v56, 0.0  ;;  %v1243_v42 = vld [vmem:[%s1572_s2 + $0x158] sm:$0xff] }
  0x2f   :  { %889 = vmatpush.bf16.msrb.mxu1 %v1244_v32  ;;  %v84_v63 = vadd.f32 %v82_v58, %v24_v48  ;;  %v113_v0 = vrot.slane %v112_v54, 1  ;;  %v126_v1 = vadd.f32 %v125_v55, %v124_v47  ;;  %v162_v2 = vld.sshfl [vmem:[#allocation1 + $0x10] sm:$0xff pattern:$0x75316420]  ;;  %v169_v3 = vrot.slane %v168_v62, 4  ;;  %v1251_v49 = vld [vmem:[%s1572_s2 + $0x198] sm:$0xff] }
  0x30   :  { %902 = vmatpush.bf16.msrb.mxu2 %v1252_v38  ;;  %v120_v4 = vrot.slane %v119_v59, 1  ;;  %v133_v5 = vadd.f32 %v132_v60, %v131_v51  ;;  %v163_v6 = vld.sshfl [vmem:[#allocation1 + $0x18] sm:$0xff pattern:$0x75316420]  ;;  %v175_v7 = vsel %vm41_vm0, %v161_v61, 0.0  ;;  %v182_v8 = vsel %vm41_vm0, %v162_v2, 0.0 }
  0x31   :  { %915 = vmatpush.bf16.msrb.mxu3 %v1260_v39  ;;  %89 = vst.msk [vmem:[#allocation2] ss:$2 sm:$0xf] %vm1484_vm4, %v84_v63  ;;  %v114_v9 = vadd.f32 %v113_v0, %v112_v54  ;;  %v127_v10 = vrot.slane %v126_v1, 1  ;;  %v170_v11 = vadd.f32 %v169_v3, %v168_v62  ;;  %v176_v12 = vrot.slane %v175_v7, 4  ;;  %v1234_v0 = vld [vmem:[%s1572_s2 + $0x110] sm:$0xff] }
  0x32   :  { %v121_v13 = vadd.f32 %v120_v4, %v119_v59  ;;  %v134_v14 = vrot.slane %v133_v5, 1  ;;  %v183_v15 = vrot.slane %v182_v8, 4  ;;  %v189_v16 = vsel %vm41_vm0, %v163_v6, 0.0  ;;  %217 = vst [vmem:[#allocation1] ss:$2 sm:$0xff] %v213_v52  ;;  %877 = vmatpush.bf16.msrb.mxu0 %v1235_v41  ;;  %v1259_v59 = vld [vmem:[%s1572_s2 + $0x1d8] sm:$0xff] }
  0x33   :  { %v128_v17 = vadd.f32 %v127_v10, %v126_v1  ;;  %v171_v18 = vrot.slane %v170_v11, 2  ;;  %v177_v19 = vadd.f32 %v176_v12, %v175_v7  ;;  %v190_v20 = vrot.slane %v189_v16, 4  ;;  %219 = vst [vmem:[#allocation1 + $0x10] ss:$2 sm:$0xff] %v214_v57  ;;  %890 = vmatpush.bf16.msrb.mxu1 %v1243_v42  ;;  %v1242_v4 = vld [vmem:[%s1572_s2 + $0x150] sm:$0xff]  ;;  %v1233_v12 = vld [vmem:[%s1572_s2 + $0x108] sm:$0xff] }
  0x34   :  { %v135_v21 = vadd.f32 %v134_v14, %v133_v5  ;;  %v140_v22 = vrot.slane %v121_v13, 7  ;;  %v184_v23 = vadd.f32 %v183_v15, %v182_v8  ;;  %v91_v31 = vld [vmem:[#allocation2 + $0x8] ss:$2 sm:$0xf]  ;;  %903 = vmatpush.bf16.msrb.mxu2 %v1251_v49  ;;  %v1241_v15 = vld [vmem:[%s1572_s2 + $0x148] sm:$0xff] }
  0x35   :  { %v141_v24 = vrot.slane %v128_v17, 6  ;;  %v172_v25 = vadd.f32 %v171_v18, %v170_v11  ;;  %v178_v26 = vrot.slane %v177_v19, 2  ;;  %v191_v27 = vadd.f32 %v190_v20, %v189_v16  ;;  %916 = vmatpush.bf16.msrb.mxu3 %v1259_v59  ;;  %v1250_v5 = vld [vmem:[%s1572_s2 + $0x190] sm:$0xff]  ;;  %v150_v7 = vld [vmem:[#allocation2 + $0x1] ss:$2 sm:$0xf] }
  0x36   :  { %v142_v28 = vrot.slane %v135_v21, 5  ;;  %v143_v29 = vsel %vm77_vm1, %v114_v9, %v140_v22  ;;  %v185_v30 = vrot.slane %v184_v23, 2  ;;  %v1258_v6 = vld [vmem:[%s1572_s2 + $0x1d0] sm:$0xff]  ;;  %878 = vmatpush.bf16.msrb.mxu0 %v1234_v0  ;;  %v1249_v16 = vld [vmem:[%s1572_s2 + $0x188] sm:$0xff] }
  0x37   :  { %v173_v32 = vrot.slane %v172_v25, 1  ;;  %v179_v33 = vadd.f32 %v178_v26, %v177_v19  ;;  %v192_v34 = vrot.slane %v191_v27, 2  ;;  %891 = vmatpush.bf16.msrb.mxu1 %v1242_v4  ;;  %v1232_v26 = vld [vmem:[%s1572_s2 + $0x100] sm:$0xff] }
  0x38   :  { %v144_v35 = vsel %vm79_vm2, %v141_v24, %v142_v28  ;;  %v186_v36 = vadd.f32 %v185_v30, %v184_v23  ;;  %904 = vmatpush.bf16.msrb.mxu2 %v1250_v5  ;;  %v1257_v23 = vld [vmem:[%s1572_s2 + $0x1c8] sm:$0xff]  ;;  %v1240_v30 = vld [vmem:[%s1572_s2 + $0x140] sm:$0xff] }
  0x39   :  { %v145_v37 = vsel %vm81_vm3, %v143_v29, %v144_v35  ;;  %v180_v38 = vrot.slane %v179_v33, 1  ;;  %v193_v39 = vadd.f32 %v192_v34, %v191_v27  ;;  %v220_v40 = vld.sshfl [vmem:[#allocation1] sm:$0xff pattern:$0x75316420]  ;;  %v174_v44 = vadd.f32 %v173_v32, %v172_v25  ;;  %917 = vmatpush.bf16.msrb.mxu3 %v1258_v6 }
  0x3a   :  { %v147_v43 = vadd.f32 %v145_v37, %v91_v31  ;;  %v187_v46 = vrot.slane %v186_v36, 1  ;;  %v221_v47 = vld.sshfl [vmem:[#allocation1 + $0x8] sm:$0xff pattern:$0x75316420]  ;;  %v228_v48 = vsel %vm41_vm0, %v220_v40, 0.0  ;;  %879 = vmatpush.bf16.msrb.mxu0 %v1233_v12  ;;  %v1248_v31 = vld [vmem:[%s1572_s2 + $0x180] sm:$0xff] }
  0x3b   :  { %v181_v50 = vadd.f32 %v180_v38, %v179_v33  ;;  %v194_v51 = vrot.slane %v193_v39, 1  ;;  %v222_v52 = vld.sshfl [vmem:[#allocation1 + $0x10] sm:$0xff pattern:$0x75316420]  ;;  %v229_v53 = vrot.slane %v228_v48, 4  ;;  %v235_v54 = vsel %vm41_vm0, %v221_v47, 0.0  ;;  %892 = vmatpush.bf16.msrb.mxu1 %v1241_v15 }
  0x3c   :  { %v188_v55 = vadd.f32 %v187_v46, %v186_v36  ;;  %v223_v56 = vld.sshfl [vmem:[#allocation1 + $0x18] sm:$0xff pattern:$0x75316420]  ;;  %v236_v57 = vrot.slane %v235_v54, 4  ;;  %v242_v58 = vsel %vm41_vm0, %v222_v52, 0.0  ;;  %905 = vmatpush.bf16.msrb.mxu2 %v1249_v16  ;;  %v1256_v35 = vld [vmem:[%s1572_s2 + $0x1c0] sm:$0xff] }
  0x3d   :  { %v195_v60 = vadd.f32 %v194_v51, %v193_v39  ;;  %v200_v61 = vrot.slane %v181_v50, 7  ;;  %v230_v62 = vadd.f32 %v229_v53, %v228_v48  ;;  %v243_v63 = vrot.slane %v242_v58, 4  ;;  %148 = vst.msk [vmem:[#allocation2 + $0x8] ss:$2 sm:$0xf] %vm1484_vm4, %v147_v43  ;;  %918 = vmatpush.bf16.msrb.mxu3 %v1257_v23 }
  0x3e   :  { %v201_v1 = vrot.slane %v188_v55, 6  ;;  %v237_v2 = vadd.f32 %v236_v57, %v235_v54  ;;  %v249_v3 = vsel %vm41_vm0, %v223_v56, 0.0  ;;  %880 = vmatpush.bf16.msrb.mxu0 %v1232_v26  ;;  %v210_v46 = vld [vmem:[#allocation2 + $0x9] ss:$2 sm:$0xf] }
  0x3f   :  { %v202_v8 = vrot.slane %v195_v60, 5  ;;  %v203_v9 = vsel %vm77_vm1, %v174_v44, %v200_v61  ;;  %v231_v10 = vrot.slane %v230_v62, 2  ;;  %v244_v11 = vadd.f32 %v243_v63, %v242_v58  ;;  %893 = vmatpush.bf16.msrb.mxu1 %v1240_v30  ;;  %v1266_v4 = vld [vmem:[%s1573_s3] ss:$0 sm:$0xff]  ;;  %s931_s3 = sshll.u32 %s1294_s18, 4  ;;  %s932_s3 = int_to_ptr.vmem [resolvable:$true] %s931_s3 }
  0x40   :  { %v238_v13 = vrot.slane %v237_v2, 2  ;;  %v250_v14 = vrot.slane %v249_v3, 4  ;;  %906 = vmatpush.bf16.msrb.mxu2 %v1248_v31 }
  0x41   :  { %v204_v17 = vsel %vm79_vm2, %v201_v1, %v202_v8  ;;  %v232_v18 = vadd.f32 %v231_v10, %v230_v62  ;;  %v245_v19 = vrot.slane %v244_v11, 2  ;;  %919 = vmatpush.bf16.msrb.mxu3 %v1256_v35 }
  0x42   :  { %v205_v20 = vsel %vm81_vm3, %v203_v9, %v204_v17  ;;  %v239_v21 = vadd.f32 %v238_v13, %v237_v2  ;;  %v251_v22 = vadd.f32 %v250_v14, %v249_v3 }
  0x43   :  { %v207_v24 = vadd.f32 %v205_v20, %v150_v7  ;;  %v246_v25 = vadd.f32 %v245_v19, %v244_v11  ;;  %v233_v27 = vrot.slane %v232_v18, 1 }
  0x44   :  { %v240_v28 = vrot.slane %v239_v21, 1  ;;  %v252_v29 = vrot.slane %v251_v22, 2 }
  0x45   :  { %208 = vst.msk [vmem:[#allocation2 + $0x1] ss:$2 sm:$0xf] %vm1484_vm4, %v207_v24  ;;  %v247_v32 = vrot.slane %v246_v25, 1  ;;  %v234_v37 = vadd.f32 %v233_v27, %v232_v18 }
  0x46   :  { %v241_v33 = vadd.f32 %v240_v28, %v239_v21  ;;  %v253_v34 = vadd.f32 %v252_v29, %v251_v22 }
  0x47   :  { %v248_v36 = vadd.f32 %v247_v32, %v246_v25 }
  0x48   :  { %v254_v38 = vrot.slane %v253_v34, 1  ;;  %v260_v39 = vrot.slane %v241_v33, 7 }
  0x49   :  { %v261_v41 = vrot.slane %v248_v36, 6 }
  0x4a   :  { %v255_v40 = vadd.f32 %v254_v38, %v253_v34  ;;  %v263_v43 = vsel %vm77_vm1, %v234_v37, %v260_v39 }
  0x4c   :  { %v262_v42 = vrot.slane %v255_v40, 5  ;;  %v272_v44 = vld [vmem:[#allocation2] sm:$0xff] }
  0x4d   :  { %v274_v47 = vmul.f32 0.25, %v272_v44 }
  0x4e   :  { %v264_v48 = vsel %vm79_vm2, %v261_v41, %v262_v42 }
  0x4f   :  { %v265_v49 = vsel %vm81_vm3, %v263_v43, %v264_v48  ;;  %278 = vst [vmem:[#allocation1] ss:$4 sm:$0xff] %v274_v47 }
  0x50   :  { %v267_v50 = vadd.f32 %v265_v49, %v210_v46 }
  0x52   :  { %268 = vst.msk [vmem:[#allocation2 + $0x9] ss:$2 sm:$0xf] %vm1484_vm4, %v267_v50 }
  0x56   :  { %v281_v51 = vld.sshfl [vmem:[#allocation1] sm:$0xff pattern:$0x73625140]  ;;  %v282_v52 = vld.sshfl [vmem:[#allocation1 + $0x8] sm:$0xff pattern:$0x73625140] }
  0x57   :  { %v297_v53 = vpack.c.bf16 %v281_v51, %v281_v51  ;;  %v298_v54 = vpack.c.bf16 %v282_v52, %v282_v52  ;;  %v283_v55 = vld.sshfl [vmem:[#allocation1 + $0x10] sm:$0xff pattern:$0x73625140]  ;;  %v284_v56 = vld.sshfl [vmem:[#allocation1 + $0x18] sm:$0xff pattern:$0x73625140] }
  0x58   :  { %v299_v57 = vpack.c.bf16 %v283_v55, %v283_v55  ;;  %v300_v58 = vpack.c.bf16 %v284_v56, %v284_v56 }
  0x59   :  { %829 = vmatmul.bf16.vlgmr.msra.gmra.mxu0 %v297_v53  ;;  %842 = vmatmul.bf16.vlgmr.msra.gmra.mxu1 %v298_v54  ;;  %v273_v59 = vld [vmem:[#allocation2 + $0x8] sm:$0xff] }
  0x5a   :  { %855 = vmatmul.bf16.vlgmr.msra.gmra.mxu2 %v299_v57  ;;  %868 = vmatmul.bf16.vlgmr.msra.gmra.mxu3 %v300_v58  ;;  %v275_v60 = vmul.f32 0.25, %v273_v59 }
  0x5c   :  { %280 = vst [vmem:[#allocation1 + $0x20] ss:$4 sm:$0xff] %v275_v60 }
  0x63   :  { %v285_v61 = vld.sshfl [vmem:[#allocation1 + $0x20] sm:$0xff pattern:$0x73625140]  ;;  %v286_v62 = vld.sshfl [vmem:[#allocation1 + $0x28] sm:$0xff pattern:$0x73625140] }
  0x64   :  { %v287_v63 = vld.sshfl [vmem:[#allocation1 + $0x30] sm:$0xff pattern:$0x73625140]  ;;  %v288_v45 = vld.sshfl [vmem:[#allocation1 + $0x38] sm:$0xff pattern:$0x73625140]  ;;  %v301_v0 = vpack.c.bf16 %v285_v61, %v285_v61  ;;  %v302_v1 = vpack.c.bf16 %v286_v62, %v286_v62 }
  0x65   :  { %v303_v2 = vpack.c.bf16 %v287_v63, %v287_v63  ;;  %v304_v3 = vpack.c.bf16 %v288_v45, %v288_v45 }
  0x69   :  { %881 = vmatmul.bf16.vlgmr.msrb.gmra.mxu0 %v301_v0  ;;  %894 = vmatmul.bf16.vlgmr.msrb.gmra.mxu1 %v302_v1 }
  0x6a   :  { %907 = vmatmul.bf16.vlgmr.msrb.gmra.mxu2 %v303_v2  ;;  %920 = vmatmul.bf16.vlgmr.msrb.gmra.mxu3 %v304_v3 }
  0xd6   :  { %v830_v5 = vpop.f32.mrf.mxu0  ;;  %v843_v6 = vpop.f32.mrf.mxu1 }
  0xd7   :  { %v831_v7 = vadd.f32 %v1266_v4, %v830_v5 }
  0xd9   :  { %v844_v10 = vadd.f32 %v843_v6, %v831_v7 }
  0xdd   :  { %v856_v8 = vpop.f32.mrf.mxu2  ;;  %v869_v9 = vpop.f32.mrf.mxu3 }
  0xde   :  { %v832_v11 = vpop.f32.mrf.mxu0  ;;  %v845_v12 = vpop.f32.mrf.mxu1  ;;  %v857_v13 = vadd.f32 %v856_v8, %v844_v10 }
  0xe0   :  { %v870_v16 = vadd.f32 %v869_v9, %v857_v13 }
  0xe5   :  { %v858_v14 = vpop.f32.mrf.mxu2  ;;  %v871_v15 = vpop.f32.mrf.mxu3 }
  0xe6   :  { %v882_v17 = vpop.f32.mrf.mxu0  ;;  %v895_v18 = vpop.f32.mrf.mxu1 }
  0xe7   :  { %v883_v19 = vadd.f32 %v882_v17, %v870_v16 }
  0xe9   :  { %v896_v20 = vadd.f32 %v895_v18, %v883_v19 }
  0xed   :  { %v908_v21 = vpop.f32.mrf.mxu2  ;;  %v921_v22 = vpop.f32.mrf.mxu3 }
  0xee   :  { %v909_v23 = vadd.f32 %v908_v21, %v896_v20  ;;  %v884_v24 = vpop.f32.mrf.mxu0  ;;  %v897_v25 = vpop.f32.mrf.mxu1 }
  0xf0   :  { %v922_v26 = vadd.f32 %v921_v22, %v909_v23 }
  0xf2   :  { %925 = vst [vmem:[#allocation3] sm:$0x3] %v922_v26 }
  0xf3   :  { %936 = dma.vmem_to_hbm [thread:$0]  %s932_s3, 32, %s934_s20, [#allocation4]  }
  0xf5   :  { %v910_v27 = vpop.f32.mrf.mxu2  ;;  %v923_v28 = vpop.f32.mrf.mxu3 }
  0xf6   :  { %1291 = dma.done.wait [#allocation4], 32  }
  0xf7   :  { %1292 = vsyncadd [#allocation4], 4294967264 }
  0xf8   :  { %941 = vsyncpa [#allocation4], 1 }

</bundles_post_ra>
